<compile_context>
chip_gen: v5e
topology: v5e:2x2
jax: 0.10.0
libtpu: 0.0.40
codegen_flags: <defaults>
</compile_context>

<pallas_src>
import functools

import jax
import jax.numpy as jnp
from jax import lax
from jax.experimental import pallas as pl
from jax.experimental.pallas import tpu as pltpu

_VMEM_LIMIT = 64 * 1024 * 1024  # fits v7x physical VMEM, raises v5e/v6e default


def _pick_tile(n):
    """Largest 'nice' dst-row tile that divides n (>=2 tiles when possible)."""
    for c in (256, 128, 64, 32, 16):
        if n % c == 0 and c < n:
            return c
    return n  # whole array (grid of 1)


# ----------------------------------------------------------------------------
# GAT kernel: fused heads, tiled over destination rows
# ----------------------------------------------------------------------------
def _gat_kernel(feat_ref, w_ref, armat_ref, almat_ref, b_ref, adjb_ref, out_ref,
                h_sc, er_sc, el_sc, *, tile_n, num_heads, out_size):
    """One GATConv over a dst-row tile.

    feat_ref: (N, Fin) bf16      w_ref: (Fin, H*D) bf16
    armat_ref: (H*D, H) f32      almat_ref: (H, H*D) f32      b_ref: (1, H*D) f32
    adjb_ref:  (tN, N) bf16 additive mask (0 edge / -1e9 non-edge)
    out_ref:   (tN, H*D) bf16
    scratch:   h_sc (N, H*D) bf16, er_sc (N, H) f32, el_sc (H, N) f32
    """
    i = pl.program_id(0)

    # Projection + attention scores computed once and cached in VMEM scratch.
    # (Requires sequential grid execution -> this axis is marked "arbitrary".
    #  For v7x 2-TC parallelism, split this into its own row-parallel call.)
    @pl.when(i == 0)
    def _():
        h = jnp.dot(feat_ref[...], w_ref[...],
                    preferred_element_type=jnp.float32)            # (N, H*D) f32
        h_sc[...] = h.astype(jnp.bfloat16)
        er_sc[...] = jnp.dot(h, armat_ref[...],
                             preferred_element_type=jnp.float32)   # (N, H) dst scores
        el_sc[...] = lax.dot_general(almat_ref[...], h,
                                     (((1,), (1,)), ((), ())),
                                     preferred_element_type=jnp.float32)  # (H, N) src

    row0 = pl.multiple_of(i * tile_n, tile_n)
    bias = adjb_ref[...].astype(jnp.float32)                       # (tN, N) add-mask
    h_src = h_sc[...]                                              # (N, H*D) bf16
    er_blk = er_sc[pl.ds(row0, tile_n), :]                         # (tN, H) f32
    el_all = el_sc[...]                                            # (H, N) f32

    head_outs = []
    for hd in range(num_heads):                                    # static, tiny H
        e = er_blk[:, hd:hd + 1] + el_all[hd:hd + 1, :]            # (tN, N)
        e = jnp.where(e > 0, e, 0.2 * e) + bias                    # leaky_relu + mask
        e = e - jnp.max(e, axis=1, keepdims=True)
        p = jnp.exp(e)
        alpha = p * pl.reciprocal(jnp.sum(p, axis=1, keepdims=True), approx=True)
        head_outs.append(
            jnp.dot(alpha.astype(jnp.bfloat16),
                    h_src[:, hd * out_size:(hd + 1) * out_size],
                    preferred_element_type=jnp.float32))           # (tN, D)

    out = jnp.concatenate(head_outs, axis=1) + b_ref[...]          # (tN, H*D)
    out_ref[...] = jnp.clip(out, 0.0, 6.0).astype(out_ref.dtype)   # relu6


def gat_forward(feat, adj_bias, p, *, num_heads, out_size):
    n, fin = feat.shape
    hd = num_heads * out_size
    tile_n = _pick_tile(n)
    kernel = functools.partial(_gat_kernel, tile_n=tile_n,
                               num_heads=num_heads, out_size=out_size)
    return pl.pallas_call(
        kernel,
        out_shape=jax.ShapeDtypeStruct((n, hd), jnp.bfloat16),
        grid_spec=pltpu.PrefetchScalarGridSpec(
            num_scalar_prefetch=0,
            grid=(n // tile_n,),
            in_specs=[
                pl.BlockSpec((n, fin), lambda i: (0, 0)),            # feat (resident)
                pl.BlockSpec((fin, hd), lambda i: (0, 0)),           # fused W
                pl.BlockSpec((hd, num_heads), lambda i: (0, 0)),     # ar block-matrix
                pl.BlockSpec((num_heads, hd), lambda i: (0, 0)),     # al block-matrix
                pl.BlockSpec((1, hd), lambda i: (0, 0)),             # bias
                pl.BlockSpec((tile_n, n), lambda i: (i, 0)),         # adj bias rows
            ],
            out_specs=pl.BlockSpec((tile_n, hd), lambda i: (i, 0)),
            scratch_shapes=[
                pltpu.VMEM((n, hd), jnp.bfloat16),
                pltpu.VMEM((n, num_heads), jnp.float32),
                pltpu.VMEM((num_heads, n), jnp.float32),
            ],
        ),
        compiler_params=pltpu.CompilerParams(
            dimension_semantics=("arbitrary",),   # scratch init at step 0
            vmem_limit_bytes=_VMEM_LIMIT,
        ),
    )(feat, p["w"], p["ar_mat"], p["al_mat"], p["b"], adj_bias)


# ----------------------------------------------------------------------------
# PathAttention pass 1: per-path score sums, accumulated over row tiles
# ----------------------------------------------------------------------------
def _path_score_kernel(z_ref, w1_ref, b1_ref, w2_ref, ssum_ref, *, num_paths):
    """z_ref: (P, tN, H*D) bf16  w1: (H*D, D) bf16  b1: (1, D)  w2: (D, 1)
    ssum_ref: (1, P) f32 accumulator (sum over N of tanh(z W1 + b1) w2)."""
    @pl.when(pl.program_id(0) == 0)
    def _():
        ssum_ref[...] = jnp.zeros_like(ssum_ref)

    parts = []
    for p in range(num_paths):
        t = jnp.tanh(jnp.dot(z_ref[p], w1_ref[...],
                             preferred_element_type=jnp.float32) + b1_ref[...])
        colsum = jnp.sum(t, axis=0, keepdims=True)                 # (1, D)
        parts.append(jnp.dot(colsum, w2_ref[...],
                             preferred_element_type=jnp.float32))  # (1, 1)
    ssum_ref[...] += jnp.concatenate(parts, axis=1)                # (1, P)


def path_score_forward(z, sem_p):
    num_paths, n, hd = z.shape
    d1 = sem_p["w1"].shape[1]
    tile = _pick_tile(n)
    return pl.pallas_call(
        functools.partial(_path_score_kernel, num_paths=num_paths),
        out_shape=jax.ShapeDtypeStruct((1, num_paths), jnp.float32),
        grid_spec=pltpu.PrefetchScalarGridSpec(
            num_scalar_prefetch=0,
            grid=(n // tile,),
            in_specs=[
                pl.BlockSpec((num_paths, tile, hd), lambda i: (0, i, 0)),
                pl.BlockSpec((hd, d1), lambda i: (0, 0)),
                pl.BlockSpec((1, d1), lambda i: (0, 0)),
                pl.BlockSpec((d1, 1), lambda i: (0, 0)),
            ],
            out_specs=pl.BlockSpec((1, num_paths), lambda i: (0, 0)),
        ),
        compiler_params=pltpu.CompilerParams(
            dimension_semantics=("arbitrary",),
            vmem_limit_bytes=_VMEM_LIMIT,
        ),
    )(z, sem_p["w1"], sem_p["b1"], sem_p["w2"])


# ----------------------------------------------------------------------------
# PathAttention pass 2 + fcn: weighted path fusion + final Linear, tiled
# ----------------------------------------------------------------------------
def _fuse_fcn_kernel(beta_ref, z_ref, wf_ref, bf_ref, out_ref, *, num_paths):
    """beta: (1, P) f32  z_ref: (P, tN, H*D) bf16  wf: (H*D, D) bf16  bf: (1, D)."""
    beta = beta_ref[...]                                            # (1, P)
    fused = beta[:, 0:1] * z_ref[0].astype(jnp.float32)
    for p in range(1, num_paths):
        fused = fused + beta[:, p:p + 1] * z_ref[p].astype(jnp.float32)
    out = jnp.dot(fused.astype(jnp.bfloat16), wf_ref[...],
                  preferred_element_type=jnp.float32) + bf_ref[...]
    out_ref[...] = out.astype(out_ref.dtype)


def fuse_fcn_forward(z, beta, fcn_p, *, out_size):
    num_paths, n, hd = z.shape
    tile = _pick_tile(n)
    return pl.pallas_call(
        functools.partial(_fuse_fcn_kernel, num_paths=num_paths),
        out_shape=jax.ShapeDtypeStruct((n, out_size), jnp.float32),
        grid_spec=pltpu.PrefetchScalarGridSpec(
            num_scalar_prefetch=0,
            grid=(n // tile,),
            in_specs=[
                pl.BlockSpec((1, num_paths), lambda i: (0, 0)),
                pl.BlockSpec((num_paths, tile, hd), lambda i: (0, i, 0)),
                pl.BlockSpec((hd, out_size), lambda i: (0, 0)),
                pl.BlockSpec((1, out_size), lambda i: (0, 0)),
            ],
            out_specs=pl.BlockSpec((tile, out_size), lambda i: (i, 0)),
        ),
        compiler_params=pltpu.CompilerParams(
            dimension_semantics=("parallel",),
            vmem_limit_bytes=_VMEM_LIMIT,
        ),
    )(beta, z, fcn_p["w"], fcn_p["b"])


# ----------------------------------------------------------------------------
# GraphConv (one GCN layer): projection cached once, propagation tiled by rows
# ----------------------------------------------------------------------------
def _graphconv_kernel(adj_ref, x_ref, w_ref, b_ref, out_ref, xw_sc, *, use_tanh):
    """adj_ref: (tN, Ns) bf16   x_ref: (Ns, Fin) bf16   w_ref: (Fin, D) bf16."""
    @pl.when(pl.program_id(0) == 0)
    def _():
        xw_sc[...] = jnp.dot(x_ref[...], w_ref[...],
                             preferred_element_type=jnp.float32).astype(jnp.bfloat16)

    acc = jnp.dot(adj_ref[...], xw_sc[...],
                  preferred_element_type=jnp.float32) + b_ref[...]
    res = jnp.tanh(acc) if use_tanh else acc
    out_ref[...] = res.astype(out_ref.dtype)


def graphconv_forward(adj, x, w, b, *, use_tanh, out_dtype):
    ns = adj.shape[0]
    din, dout = w.shape
    tile = _pick_tile(ns)
    return pl.pallas_call(
        functools.partial(_graphconv_kernel, use_tanh=use_tanh),
        out_shape=jax.ShapeDtypeStruct((ns, dout), out_dtype),
        grid_spec=pltpu.PrefetchScalarGridSpec(
            num_scalar_prefetch=0,
            grid=(ns // tile,),
            in_specs=[
                pl.BlockSpec((tile, ns), lambda i: (i, 0)),          # adj rows
                pl.BlockSpec((ns, din), lambda i: (0, 0)),           # features
                pl.BlockSpec((din, dout), lambda i: (0, 0)),         # weight
                pl.BlockSpec((1, dout), lambda i: (0, 0)),           # bias
            ],
            out_specs=pl.BlockSpec((tile, dout), lambda i: (i, 0)),
            scratch_shapes=[pltpu.VMEM((ns, dout), jnp.bfloat16)],
        ),
        compiler_params=pltpu.CompilerParams(
            dimension_semantics=("arbitrary",),   # scratch init at step 0
            vmem_limit_bytes=_VMEM_LIMIT,
        ),
    )(adj, x, w, b)


# ----------------------------------------------------------------------------
# PDFC forward (glue)
# ----------------------------------------------------------------------------
def pdfc_forward(params, graph, features, adj_g, sen_feat, adj, k,
                 normalized=False, *, num_heads, out_size):
    # PDFCNetlayer: one fused-head GATConv per metapath.
    # (Further fusion of all metapaths into one pallas_call would need padding
    #  the per-path Fin to a common size; kept as separate calls here.)
    embs = []
    for i, key in enumerate(features.keys()):
        feat = features[key].astype(jnp.bfloat16)
        adj_bias = jnp.where(graph[key] > 0, 0.0, -1e9).astype(jnp.bfloat16)
        embs.append(gat_forward(feat, adj_bias, params["gat"][i],
                                num_heads=num_heads, out_size=out_size))
    z = jnp.stack(embs, axis=0)                       # (P, N, H*D) bf16
    n = z.shape[1]

    # PathAttention: tiled score accumulation -> P-scalar softmax -> tiled fuse+fcn.
    ssum = path_score_forward(z, params["sem"])       # (1, P) sums over N
    beta = jax.nn.softmax(ssum[0] / n).reshape(1, -1).astype(jnp.float32)
    f_out = fuse_fcn_forward(z, beta, params["fcn"], out_size=out_size)

    # GCN over the (pre-normalized) sentence adjacency: tanh layer then linear.
    adj_gb = adj_g.astype(jnp.bfloat16)
    h1 = graphconv_forward(adj_gb, sen_feat.astype(jnp.bfloat16),
                           params["gcn"]["w1"], params["gcn"]["b1"],
                           use_tanh=True, out_dtype=jnp.bfloat16)
    p_out = graphconv_forward(adj_gb, h1, params["gcn"]["w2"], params["gcn"]["b2"],
                              use_tanh=False, out_dtype=jnp.float32)

    # TODO(synk): loss_function(F, P, adj, k, normalized) is not defined in the
    # reference code; returning (F, P) in place of (tr, ZF).
    return f_out, p_out


# ----------------------------------------------------------------------------
# Parameter init (raw, module-shaped) + fusion into kernel layout
# ----------------------------------------------------------------------------
def init_params(key, fin_per_path, sen_in_size, out_size, num_heads):
    hd = out_size * num_heads
    ks = iter(jax.random.split(key, 32))
    params = {"gat": [], "sem": {}, "fcn": {}, "gcn": {}}
    for fin in fin_per_path:
        params["gat"].append({
            "w":  0.2 * jax.random.normal(next(ks), (num_heads, fin, out_size), jnp.float32),
            "al": 0.2 * jax.random.normal(next(ks), (num_heads, 1, out_size), jnp.float32),
            "ar": 0.2 * jax.random.normal(next(ks), (num_heads, 1, out_size), jnp.float32),
            "b":  jnp.zeros((num_heads, 1, out_size), jnp.float32),
        })
    params["sem"] = {
        "w1": 0.2 * jax.random.normal(next(ks), (hd, out_size), jnp.float32),
        "b1": jnp.zeros((1, out_size), jnp.float32),
        "w2": 0.2 * jax.random.normal(next(ks), (out_size, 1), jnp.float32),
    }
    params["fcn"] = {
        "w": 0.2 * jax.random.normal(next(ks), (hd, out_size), jnp.float32),
        "b": jnp.zeros((1, out_size), jnp.float32),
    }
    params["gcn"] = {
        "w1": 0.2 * jax.random.normal(next(ks), (sen_in_size, out_size), jnp.float32),
        "b1": jnp.zeros((1, out_size), jnp.float32),
        "w2": 0.2 * jax.random.normal(next(ks), (out_size, out_size), jnp.float32),
    }
    return params


def prepare_params(raw, *, num_heads, out_size):
    """Fuse per-head GAT params into lane-dense layouts and cast matmul weights to bf16."""
    hd = num_heads * out_size
    eye = jnp.eye(num_heads, dtype=jnp.float32)
    gat = []
    for g in raw["gat"]:
        w_all = jnp.transpose(g["w"], (1, 0, 2)).reshape(-1, hd).astype(jnp.bfloat16)
        ar2 = g["ar"].reshape(num_heads, out_size)
        al2 = g["al"].reshape(num_heads, out_size)
        # Block-structured score matrices: er = h @ ar_mat, el = al_mat ·contract· h.
        ar_mat = (eye[:, None, :] * ar2[:, :, None]).reshape(hd, num_heads)
        al_mat = (eye[:, :, None] * al2[:, None, :]).reshape(num_heads, hd)
        gat.append({"w": w_all, "ar_mat": ar_mat, "al_mat": al_mat,
                    "b": g["b"].reshape(1, hd)})
    return {
        "gat": gat,
        "sem": {"w1": raw["sem"]["w1"].astype(jnp.bfloat16),
                "b1": raw["sem"]["b1"], "w2": raw["sem"]["w2"]},
        "fcn": {"w": raw["fcn"]["w"].astype(jnp.bfloat16), "b": raw["fcn"]["b"]},
        "gcn": {"w1": raw["gcn"]["w1"].astype(jnp.bfloat16), "b1": raw["gcn"]["b1"],
                "w2": raw["gcn"]["w2"].astype(jnp.bfloat16),
                "b2": jnp.zeros((1, out_size), jnp.float32)},
    }


# ----------------------------------------------------------------------------
# Example run
# ----------------------------------------------------------------------------
if __name__ == "__main__":
    N = 32            # nodes per metapath graph (2 dst-row tiles of 16)
    NS = 32           # sentence nodes for the GCN
    FIN = {"mp0": 24, "mp1": 16}
    SEN_IN = 24
    OUT_SIZE = 8
    NUM_HEADS = 2
    K = 3             # unused (loss_function undefined in reference)

    root = jax.random.PRNGKey(0)
    keys = jax.random.split(root, 10)

    def rand_adj(k, n):
        a = (jax.random.uniform(k, (n, n)) < 0.3).astype(jnp.float32)
        return jnp.maximum(a, jnp.eye(n, dtype=jnp.float32))   # ensure self-loops

    features = {
        "mp0": jax.random.normal(keys[0], (N, FIN["mp0"]), jnp.float32),
        "mp1": jax.random.normal(keys[1], (N, FIN["mp1"]), jnp.float32),
    }
    graph = {
        "mp0": rand_adj(keys[2], N),
        "mp1": rand_adj(keys[3], N),
    }

    # symmetric normalized adjacency for the sentence GCN
    a_raw = rand_adj(keys[4], NS)
    a_sym = jnp.maximum(a_raw, a_raw.T)
    deg = jnp.sum(a_sym, axis=1)
    d_inv_sqrt = 1.0 / jnp.sqrt(deg)
    adj_g = a_sym * d_inv_sqrt[:, None] * d_inv_sqrt[None, :]

    sen_feat = jax.random.normal(keys[5], (NS, SEN_IN), jnp.float32)
    adj = rand_adj(keys[6], N)     # consumed only by the (undefined) loss_function

    raw_params = init_params(keys[7], [FIN["mp0"], FIN["mp1"]], SEN_IN,
                             OUT_SIZE, NUM_HEADS)
    params = prepare_params(raw_params, num_heads=NUM_HEADS, out_size=OUT_SIZE)

    f_out, p_out = pdfc_forward(params, graph, features, adj_g, sen_feat,
                                adj, K, normalized=False,
                                num_heads=NUM_HEADS, out_size=OUT_SIZE)
    jax.block_until_ready((f_out, p_out))

    assert f_out.shape == (N, OUT_SIZE) and p_out.shape == (NS, OUT_SIZE)
    assert bool(jnp.all(jnp.isfinite(f_out))) and bool(jnp.all(jnp.isfinite(p_out)))
    print("KERNEL_OK")
</pallas_src>

<mosaic_0001>
module attributes {stable_mosaic.version = 11 : i64} {
  func.func @_gat_kernel(%arg0: i32, %arg1: memref<32x24xbf16, #tpu.memory_space<vmem>>, %arg2: memref<24x16xbf16, #tpu.memory_space<vmem>>, %arg3: memref<16x2xf32, #tpu.memory_space<vmem>>, %arg4: memref<2x16xf32, #tpu.memory_space<vmem>>, %arg5: memref<1x16xf32, #tpu.memory_space<vmem>>, %arg6: memref<16x32xbf16, #tpu.memory_space<vmem>>, %arg7: memref<16x16xbf16, #tpu.memory_space<vmem>>, %arg8: memref<32x16xbf16, #tpu.memory_space<vmem>>, %arg9: memref<32x2xf32, #tpu.memory_space<vmem>>, %arg10: memref<2x32xf32, #tpu.memory_space<vmem>>) attributes {dimension_semantics = [#tpu.dimension_semantics<arbitrary>], iteration_bounds = array<i64: 2>, scalar_prefetch = 0 : i64, scratch_operands = 3 : i64, tpu.core_type = #tpu.core_type<tc>, window_params = [{pipeline_mode = #tpu.pipeline_mode<synchronous>, transform_indices = @transform_0, window_bounds = array<i64: 32, 24>}, {pipeline_mode = #tpu.pipeline_mode<synchronous>, transform_indices = @transform_1, window_bounds = array<i64: 24, 16>}, {pipeline_mode = #tpu.pipeline_mode<synchronous>, transform_indices = @transform_2, window_bounds = array<i64: 16, 2>}, {pipeline_mode = #tpu.pipeline_mode<synchronous>, transform_indices = @transform_3, window_bounds = array<i64: 2, 16>}, {pipeline_mode = #tpu.pipeline_mode<synchronous>, transform_indices = @transform_4, window_bounds = array<i64: 1, 16>}, {transform_indices = @transform_5, window_bounds = array<i64: 16, 32>}, {transform_indices = @transform_6, window_bounds = array<i64: 16, 16>}]} {
    %c0_i32 = arith.constant 0 : i32
    %0 = arith.cmpi eq, %arg0, %c0_i32 : i32
    %1 = arith.extui %0 : i1 to i32
    %c0_i32_0 = arith.constant 0 : i32
    %2 = arith.cmpi ne, %1, %c0_i32_0 : i32
    scf.if %2 {
      %c0_22 = arith.constant 0 : index
      %c0_23 = arith.constant 0 : index
      %69 = vector.load %arg1[%c0_22, %c0_23] : memref<32x24xbf16, #tpu.memory_space<vmem>>, vector<32x24xbf16>
      %c0_24 = arith.constant 0 : index
      %c0_25 = arith.constant 0 : index
      %70 = vector.load %arg2[%c0_24, %c0_25] : memref<24x16xbf16, #tpu.memory_space<vmem>>, vector<24x16xbf16>
      %cst_26 = arith.constant dense<0.000000e+00> : vector<32x16xf32>
      %71 = tpu.matmul %69, %70, %cst_26 {dimension_numbers = #tpu.dot_dimension_numbers<[1], [0], [0], [1], [0, 0, 1, 1], [], []>} : vector<32x24xbf16>, vector<24x16xbf16>, vector<32x16xf32> -> vector<32x16xf32>
      %72 = arith.truncf %71 : vector<32x16xf32> to vector<32x16xbf16>
      %c0_27 = arith.constant 0 : index
      %c0_28 = arith.constant 0 : index
      %73 = vector.load %arg8[%c0_27, %c0_28] : memref<32x16xbf16, #tpu.memory_space<vmem>>, vector<32x16xbf16>
      tpu.vector_store %arg8[%c0_27, %c0_28], %72 {strides = array<i32>} : memref<32x16xbf16, #tpu.memory_space<vmem>>, vector<32x16xbf16>,
      %c0_29 = arith.constant 0 : index
      %c0_30 = arith.constant 0 : index
      %74 = vector.load %arg3[%c0_29, %c0_30] : memref<16x2xf32, #tpu.memory_space<vmem>>, vector<16x2xf32>
      %cst_31 = arith.constant dense<0.000000e+00> : vector<32x2xf32>
      %75 = tpu.matmul %71, %74, %cst_31 {dimension_numbers = #tpu.dot_dimension_numbers<[1], [0], [0], [1], [0, 0, 1, 1], [], []>} : vector<32x16xf32>, vector<16x2xf32>, vector<32x2xf32> -> vector<32x2xf32>
      %c0_32 = arith.constant 0 : index
      %c0_33 = arith.constant 0 : index
      %76 = vector.load %arg9[%c0_32, %c0_33] : memref<32x2xf32, #tpu.memory_space<vmem>>, vector<32x2xf32>
      tpu.vector_store %arg9[%c0_32, %c0_33], %75 {strides = array<i32>} : memref<32x2xf32, #tpu.memory_space<vmem>>, vector<32x2xf32>,
      %c0_34 = arith.constant 0 : index
      %c0_35 = arith.constant 0 : index
      %77 = vector.load %arg4[%c0_34, %c0_35] : memref<2x16xf32, #tpu.memory_space<vmem>>, vector<2x16xf32>
      %cst_36 = arith.constant dense<0.000000e+00> : vector<2x32xf32>
      %78 = tpu.matmul %77, %71, %cst_36 {dimension_numbers = #tpu.dot_dimension_numbers<[1], [1], [0], [0], [0, 0, 1, 0], [], []>} : vector<2x16xf32>, vector<32x16xf32>, vector<2x32xf32> -> vector<2x32xf32>
      %c0_37 = arith.constant 0 : index
      %c0_38 = arith.constant 0 : index
      %79 = vector.load %arg10[%c0_37, %c0_38] : memref<2x32xf32, #tpu.memory_space<vmem>>, vector<2x32xf32>
      tpu.vector_store %arg10[%c0_37, %c0_38], %78 {strides = array<i32>} : memref<2x32xf32, #tpu.memory_space<vmem>>, vector<2x32xf32>,
    } else {
    }
    %c16_i32 = arith.constant 16 : i32
    %3 = arith.muli %arg0, %c16_i32 : i32
    %4 = tpu.assume_multiple %3, 16 : i32
    %c0 = arith.constant 0 : index
    %c0_1 = arith.constant 0 : index
    %5 = vector.load %arg6[%c0, %c0_1] : memref<16x32xbf16, #tpu.memory_space<vmem>>, vector<16x32xbf16>
    %6 = arith.extf %5 : vector<16x32xbf16> to vector<16x32xf32>
    %c0_2 = arith.constant 0 : index
    %c0_3 = arith.constant 0 : index
    %7 = vector.load %arg8[%c0_2, %c0_3] : memref<32x16xbf16, #tpu.memory_space<vmem>>, vector<32x16xbf16>
    %8 = arith.index_cast %4 : i32 to index
    %c0_4 = arith.constant 0 : index
    %9 = vector.load %arg9[%8, %c0_4] : memref<32x2xf32, #tpu.memory_space<vmem>>, vector<16x2xf32>
    %c0_5 = arith.constant 0 : index
    %c0_6 = arith.constant 0 : index
    %10 = vector.load %arg10[%c0_5, %c0_6] : memref<2x32xf32, #tpu.memory_space<vmem>>, vector<2x32xf32>
    %11 = vector.extract_strided_slice %9 {offsets = [0, 0], sizes = [16, 1], strides = [1, 1]} : vector<16x2xf32> to vector<16x1xf32>
    %12 = vector.extract_strided_slice %10 {offsets = [0, 0], sizes = [1, 32], strides = [1, 1]} : vector<2x32xf32> to vector<1x32xf32>
    %13 = vector.broadcast %11 : vector<16x1xf32> to vector<16x32xf32>
    %14 = vector.broadcast %12 : vector<1x32xf32> to vector<16x32xf32>
    %15 = arith.addf %13, %14 : vector<16x32xf32>
    %cst = arith.constant 0.000000e+00 : f32
    %16 = vector.broadcast %cst : f32 to vector<16x32xf32>
    %17 = arith.cmpf ogt, %15, %16 : vector<16x32xf32>
    %cst_7 = arith.constant 2.000000e-01 : f32
    %18 = vector.broadcast %cst_7 : f32 to vector<16x32xf32>
    %19 = arith.mulf %18, %15 : vector<16x32xf32>
    %20 = arith.select %17, %15, %19 : vector<16x32xi1>, vector<16x32xf32>
    %21 = arith.addf %20, %6 : vector<16x32xf32>
    %cst_8 = arith.constant dense<0xFF800000> : vector<16xf32>
    %22 = vector.multi_reduction <maximumf>, %21, %cst_8 [1] : vector<16x32xf32> to vector<16xf32>
    %23 = vector.shape_cast %22 : vector<16xf32> to vector<16x1xf32>
    %24 = vector.broadcast %23 : vector<16x1xf32> to vector<16x32xf32>
    %25 = arith.subf %21, %24 : vector<16x32xf32>
    %26 = math.exp %25 : vector<16x32xf32>
    %cst_9 = arith.constant dense<0.000000e+00> : vector<16xf32>
    %27 = vector.multi_reduction <add>, %26, %cst_9 [1] : vector<16x32xf32> to vector<16xf32>
    %28 = vector.shape_cast %27 : vector<16xf32> to vector<16x1xf32>
    %29 = tpu.reciprocal %28 {approx = true} : vector<16x1xf32> -> vector<16x1xf32>
    %30 = vector.broadcast %29 : vector<16x1xf32> to vector<16x32xf32>
    %31 = arith.mulf %26, %30 : vector<16x32xf32>
    %32 = arith.truncf %31 : vector<16x32xf32> to vector<16x32xbf16>
    %33 = vector.extract_strided_slice %7 {offsets = [0, 0], sizes = [32, 8], strides = [1, 1]} : vector<32x16xbf16> to vector<32x8xbf16>
    %cst_10 = arith.constant dense<0.000000e+00> : vector<16x8xf32>
    %34 = tpu.matmul %32, %33, %cst_10 {dimension_numbers = #tpu.dot_dimension_numbers<[1], [0], [0], [1], [0, 0, 1, 1], [], []>} : vector<16x32xbf16>, vector<32x8xbf16>, vector<16x8xf32> -> vector<16x8xf32>
    %35 = vector.extract_strided_slice %9 {offsets = [0, 1], sizes = [16, 1], strides = [1, 1]} : vector<16x2xf32> to vector<16x1xf32>
    %36 = vector.extract_strided_slice %10 {offsets = [1, 0], sizes = [1, 32], strides = [1, 1]} : vector<2x32xf32> to vector<1x32xf32>
    %37 = vector.broadcast %35 : vector<16x1xf32> to vector<16x32xf32>
    %38 = vector.broadcast %36 : vector<1x32xf32> to vector<16x32xf32>
    %39 = arith.addf %37, %38 : vector<16x32xf32>
    %cst_11 = arith.constant 0.000000e+00 : f32
    %40 = vector.broadcast %cst_11 : f32 to vector<16x32xf32>
    %41 = arith.cmpf ogt, %39, %40 : vector<16x32xf32>
    %cst_12 = arith.constant 2.000000e-01 : f32
    %42 = vector.broadcast %cst_12 : f32 to vector<16x32xf32>
    %43 = arith.mulf %42, %39 : vector<16x32xf32>
    %44 = arith.select %41, %39, %43 : vector<16x32xi1>, vector<16x32xf32>
    %45 = arith.addf %44, %6 : vector<16x32xf32>
    %cst_13 = arith.constant dense<0xFF800000> : vector<16xf32>
    %46 = vector.multi_reduction <maximumf>, %45, %cst_13 [1] : vector<16x32xf32> to vector<16xf32>
    %47 = vector.shape_cast %46 : vector<16xf32> to vector<16x1xf32>
    %48 = vector.broadcast %47 : vector<16x1xf32> to vector<16x32xf32>
    %49 = arith.subf %45, %48 : vector<16x32xf32>
    %50 = math.exp %49 : vector<16x32xf32>
    %cst_14 = arith.constant dense<0.000000e+00> : vector<16xf32>
    %51 = vector.multi_reduction <add>, %50, %cst_14 [1] : vector<16x32xf32> to vector<16xf32>
    %52 = vector.shape_cast %51 : vector<16xf32> to vector<16x1xf32>
    %53 = tpu.reciprocal %52 {approx = true} : vector<16x1xf32> -> vector<16x1xf32>
    %54 = vector.broadcast %53 : vector<16x1xf32> to vector<16x32xf32>
    %55 = arith.mulf %50, %54 : vector<16x32xf32>
    %56 = arith.truncf %55 : vector<16x32xf32> to vector<16x32xbf16>
    %57 = vector.extract_strided_slice %7 {offsets = [0, 8], sizes = [32, 8], strides = [1, 1]} : vector<32x16xbf16> to vector<32x8xbf16>
    %cst_15 = arith.constant dense<0.000000e+00> : vector<16x8xf32>
    %58 = tpu.matmul %56, %57, %cst_15 {dimension_numbers = #tpu.dot_dimension_numbers<[1], [0], [0], [1], [0, 0, 1, 1], [], []>} : vector<16x32xbf16>, vector<32x8xbf16>, vector<16x8xf32> -> vector<16x8xf32>
    %59 = tpu.concatenate %34, %58 in 1 : vector<16x8xf32>, vector<16x8xf32> -> vector<16x16xf32>
    %c0_16 = arith.constant 0 : index
    %c0_17 = arith.constant 0 : index
    %60 = vector.load %arg5[%c0_16, %c0_17] : memref<1x16xf32, #tpu.memory_space<vmem>>, vector<1x16xf32>
    %61 = vector.broadcast %60 : vector<1x16xf32> to vector<16x16xf32>
    %62 = arith.addf %59, %61 : vector<16x16xf32>
    %cst_18 = arith.constant 0.000000e+00 : f32
    %cst_19 = arith.constant 6.000000e+00 : f32
    %63 = vector.broadcast %cst_18 : f32 to vector<16x16xf32>
    %64 = arith.maximumf %63, %62 : vector<16x16xf32>
    %65 = vector.broadcast %cst_19 : f32 to vector<16x16xf32>
    %66 = arith.minimumf %65, %64 : vector<16x16xf32>
    %67 = arith.truncf %66 : vector<16x16xf32> to vector<16x16xbf16>
    %c0_20 = arith.constant 0 : index
    %c0_21 = arith.constant 0 : index
    %68 = vector.load %arg7[%c0_20, %c0_21] : memref<16x16xbf16, #tpu.memory_space<vmem>>, vector<16x16xbf16>
    tpu.vector_store %arg7[%c0_20, %c0_21], %67 {strides = array<i32>} : memref<16x16xbf16, #tpu.memory_space<vmem>>, vector<16x16xbf16>,
    return
  }
  func.func @transform_0(%arg0: i32) -> (i32, i32) {
    %c0_i32 = arith.constant 0 : i32
    %c0_i32_0 = arith.constant 0 : i32
    %c0_i32_1 = arith.constant 0 : i32
    return %c0_i32, %c0_i32_0 : i32, i32
  }
  func.func @transform_1(%arg0: i32) -> (i32, i32) {
    %c0_i32 = arith.constant 0 : i32
    %c0_i32_0 = arith.constant 0 : i32
    %c0_i32_1 = arith.constant 0 : i32
    return %c0_i32, %c0_i32_0 : i32, i32
  }
  func.func @transform_2(%arg0: i32) -> (i32, i32) {
    %c0_i32 = arith.constant 0 : i32
    %c0_i32_0 = arith.constant 0 : i32
    %c0_i32_1 = arith.constant 0 : i32
    return %c0_i32, %c0_i32_0 : i32, i32
  }
  func.func @transform_3(%arg0: i32) -> (i32, i32) {
    %c0_i32 = arith.constant 0 : i32
    %c0_i32_0 = arith.constant 0 : i32
    %c0_i32_1 = arith.constant 0 : i32
    return %c0_i32, %c0_i32_0 : i32, i32
  }
  func.func @transform_4(%arg0: i32) -> (i32, i32) {
    %c0_i32 = arith.constant 0 : i32
    %c0_i32_0 = arith.constant 0 : i32
    %c0_i32_1 = arith.constant 0 : i32
    return %c0_i32, %c0_i32_0 : i32, i32
  }
  func.func @transform_5(%arg0: i32) -> (i32, i32) {
    %c0_i32 = arith.constant 0 : i32
    %c0_i32_0 = arith.constant 0 : i32
    return %arg0, %c0_i32 : i32, i32
  }
  func.func @transform_6(%arg0: i32) -> (i32, i32) {
    %c0_i32 = arith.constant 0 : i32
    %c0_i32_0 = arith.constant 0 : i32
    return %arg0, %c0_i32 : i32, i32
  }
}

</mosaic_0001>

<bundles_post_ra>
// kernel: tpu_custom_call.1
= control target key start
LH: loop header
LB: loop body
LE: loop exit
PB: predicated region body
PF: predicated region fallthrough
CT: control target
= control target key end

     0   :  { %s773_s21 = smov 0   ;;  %s847_s0 = inlined_call_operand.vmem [shape: bf16[32,24], index: 0, kind: input, shape index: {}]   ;;  %s848_s1 = inlined_call_operand.vmem [shape: bf16[24,16], index: 1, kind: input, shape index: {}]   ;;  %s849_s2 = inlined_call_operand.vmem [shape: f32[16,2], index: 2, kind: input, shape index: {}]   ;;  %s850_s3 = inlined_call_operand.vmem [shape: f32[2,16], index: 3, kind: input, shape index: {}]   ;;  %s851_s4 = inlined_call_operand.vmem [shape: f32[1,16], index: 4, kind: input, shape index: {}]   ;;  %s852_s5 = inlined_call_operand.vmem [shape: bf16[32,32], index: 5, kind: input, shape index: {}]   ;;  %s853_s6 = inlined_call_operand.vmem [shape: bf16[32,16], index: 6, kind: output, shape index: {}]  }
   0x1 LB: > { %s779_s22 = sadd.s32 4294967295, %s732_s21   ;;  %p640_p0 = scmp.ge.s32.totalorder %s732_s21, 1  ;;  %s732_s21 = sphi %s773_s21, %s16_s21  }
   0x2   : > { %p213_p1 = scmp.lt.s32.totalorder %s732_s21, 3 }
   0x4   : > { %p214_p2 = pnand %p640_p0, %p213_p1 }
   0x5   : > { %s641_s23 = sshll.u32 (!%p214_p2), %s779_s22, 1  ;;  %p645_p4 = scmp.ne.s32.totalorder (!%p214_p2), %s779_s22, 0 }
   0x6   : > { %217 = sbr.rel (%p214_p2) target bundleno = 967 (0x3c7), region = 44  ;;  %p244_p3 = scmp.lt.s32.totalorder (!%p214_p2), %s641_s23, 3 }
   0xb   : > { %s855_s23 = smov (!%p244_p3, %s641_s23), 3  ;;  %259 = sbr.rel (%p645_p4) target bundleno = 318 (0x13e), region = 48 }
   0xc   : > { %s642_s24 = sshll.u32 %s855_s23, 2 }
   0xd   : > { %s787_s27 = scalar_lea.vmem %s852_s5, %s642_s24  ;;  %s792_s30 = scalar_lea.vmem %s853_s6, %s642_s24 }
  0x10   : > { %v266_v0 = vld [vmem:[%s848_s1 + $0x8] sm:$0xf]  ;;  %vm293_vm0 = vcmask 1043456   ;;  %v684_v5 = vld [vmem:[%s848_s1] sm:$0xff]  ;;  %vm286_vm1 = vcmask 195584   ;;  %vm327_vm2 = vcmask 130048  }
  0x11   : > { %v282_v1 = vunpack.c.l.b16 %v266_v0  ;;  %v326_v2 = vld [vmem:[%s849_s2 + $0x8] sm:$0xff]  ;;  %v682_v6 = vld [vmem:[%s847_s0] sm:$0xff]  ;;  %vm320_vm3 = vcmask 125952   ;;  %vm369_vm4 = vcmask 15360   ;;  %vm398_vm5 = vcmask 254976  }
  0x12   : > { %354 = vmatpush.msra.mxu1 %v326_v2  ;;  %693 = vmatpush.msra.mxu2 %v326_v2  ;;  %v683_v7 = vld [vmem:[%s847_s0 + $0x8] sm:$0xff]  ;;  %v325_v8 = vld [vmem:[%s849_s2] sm:$0xff] }
  0x13   : > { %v284_v3 = vpack.c.b16 %v282_v1, %v282_v1  ;;  %v374_v17 = vld [vmem:[%s850_s3] sm:$0x3] }
  0x14   : > { %355 = vmatpush.msra.mxu1 %v325_v8  ;;  %694 = vmatpush.msra.mxu2 %v325_v8 }
  0x15   : > { %v295_v4 = vsel %vm293_vm0, %v284_v3, 0 }
  0x16   : > { %303 = vmatpush.bf16.msra.mxu0 %v295_v4  ;;  %691 = vmatpush.bf16.msra.mxu3 %v295_v4 }
  0x1a   : > { %304 = vmatpush.bf16.msra.mxu0 %v684_v5  ;;  %692 = vmatpush.bf16.msra.mxu3 %v684_v5 }
  0x1d   : > { %658 = vmatmul.msk.bf16.vlgmr.msra.gmra.mxu0 %vm286_vm1, %v682_v6  ;;  %659 = vmatmul.msk.bf16.vlgmr.msra.gmra.mxu3 %vm286_vm1, %v683_v7 }
  0x9a   : > { %v306_v9 = vpop.f32.mrf.mxu0 }
  0x9b   : > { %v316_v10 = vpack.c.bf16 %v306_v9, %v306_v9  ;;  %660 = vmatmul.msk.f32.vlgmr.msra.gmra.mxu1 %vm327_vm2, %v306_v9 }
  0x9d   : > { %321 = vst.msk [vmem:[#allocation2] sm:$0xf] %vm320_vm3, %v316_v10 }
  0xa0   : > { %v311_v11 = vpop.f32.mrf.mxu3 }
  0xa1   : > { %v318_v12 = vpack.c.bf16 %v311_v11, %v311_v11 }
  0xa2   : > { %v308_v13 = vpop.f32.mrf.mxu0 }
  0xa3   : > { %323 = vst.msk [vmem:[#allocation2 + $0x8] sm:$0xf] %vm320_vm3, %v318_v12  ;;  %v317_v14 = vpack.c.bf16 %v308_v13, %v308_v13  ;;  %661 = vmatmul.msk.f32.gmra.mxu1 %vm327_vm2, %v308_v13 }
  0xa5   : > { %322 = vst.msk [vmem:[#allocation2 + $0x4] sm:$0xf] %vm320_vm3, %v317_v14 }
  0xa8   : > { %v313_v15 = vpop.f32.mrf.mxu3 }
  0xa9   : > { %v319_v16 = vpack.c.bf16 %v313_v15, %v313_v15  ;;  %663 = vmatmul.msk.f32.vlgmr.msra.gmra.mxu2 %vm327_vm2, %v313_v15 }
  0xaa   : > { %664 = vmatpush.xpose.msk.msrb.mxu2 %vm327_vm2, %v313_v15 }
  0xab   : > { %324 = vst.msk [vmem:[#allocation2 + $0xc] sm:$0xf] %vm320_vm3, %v319_v16  ;;  %662 = vmatmul.msk.f32.gmra.mxu1 %vm327_vm2, %v311_v11 }
  0xae   : > { %665 = vmatpush.xpose.msk.msrb.mxu2 %vm327_vm2, %v311_v11 }
  0xb2   : > { %666 = vmatpush.xpose.msk.msrb.mxu2 %vm327_vm2, %v308_v13 }
  0xb6   : > { %667 = vmatpush.xpose.msk.msrb.mxu2 %vm327_vm2, %v306_v9 }
  0xb9   : > { %668 = vmatmul.msk.f32.vlgmr.msrb.gmra.mxu2 %vm327_vm2, %v374_v17 }
 0x118   : > { %v357_v18 = vpop.f32.mrf.mxu1 }
 0x119   : > { %370 = vst.msk [vmem:[#allocation3] sm:$0xff] %vm369_vm4, %v357_v18 }
 0x120   : > { %v360_v19 = vpop.f32.mrf.mxu1 }
 0x121   : > { %371 = vst.msk [vmem:[#allocation3 + $0x8] sm:$0xff] %vm369_vm4, %v360_v19 }
 0x128   : > { %v363_v20 = vpop.f32.mrf.mxu1 }
 0x129   : > { %372 = vst.msk [vmem:[#allocation3 + $0x10] sm:$0xff] %vm369_vm4, %v363_v20 }
 0x12c   : > { %v366_v21 = vpop.f32.mrf.mxu2 }
 0x12d   : > { %373 = vst.msk [vmem:[#allocation3 + $0x18] sm:$0xff] %vm369_vm4, %v366_v21 }
 0x13c   : > { %v395_v22 = vpop.f32.mrf.mxu2 }
 0x13d   : > { %399 = vst.msk [vmem:[#allocation4] sm:$0x3] %vm398_vm5, %v395_v22 }
 0x13e PF: > { %s669_s23 = sshll.u32 %s779_s22, 4  ;;  %v734_v23 = vmov 1   ;;  %v735_v24 = vmov 0   ;;  %v686_v27 = vld [vmem:[#allocation2 + $0x8] sm:$0xff]  ;;  %v688_v31 = vld [vmem:[%s787_s27] sm:$0xff]   ;;  %vm434_vm8 = vcmask 261120  }
 0x13f   : > { %707 = vset.pattern.permute.xlu0 %v734_v23  ;;  %708 = vset.pattern.permute.xlu1 %v735_v24  ;;  %s409_s24 = scalar_lea.vmem [#allocation3], %s669_s23  ;;  %v689_v36 = vunpack.c.l.bf16 %v688_v31  ;;  %v690_v49 = vunpack.c.h.bf16 %v688_v31  ;;  %s736_s22 = smov 120   ;;  %v685_v58 = vld [vmem:[#allocation2] sm:$0xff]  ;;  %vm560_vm11 = vcmask 64512   ;;  %vm575_vm12 = vcmask 125952  }
 0x140   : > { %v410_v25 = vld [vmem:[%s409_s24] sm:$0xff]  ;;  %v411_v26 = vld [vmem:[%s409_s24 + $0x8] sm:$0xff]  ;;  %479 = vmatpush.bf16.msra.mxu0 %v686_v27  ;;  %s737_s25 = smov 8  }
 0x141   : > { %415 = vperm.xlu1 %708, %v410_v25   ;;  %488 = vperm.xlu0 %707, %v410_v25  }
 0x144   : > { %v412_v28 = vld [vmem:[#allocation4] sm:$0x3]  ;;  %480 = vmatpush.bf16.msra.mxu0 %v685_v58 }
 0x145   : > { %v423_v29 = vperm.slane %v412_v28, 0  ;;  %v495_v30 = vperm.slane %v412_v28, 1 }
 0x149   : > { %420 = vperm.xlu1 %708, %v411_v26   ;;  %492 = vperm.xlu0 %707, %v411_v26  }
 0x1b3   : > { %v416_v32 = vpop.permute.xlu1 %415  ;;  %v489_v33 = vpop.permute.xlu0 %488 }
 0x1b4   : > { %v424_v34 = vadd.f32 %v423_v29, %v416_v32  ;;  %v496_v35 = vadd.f32 %v495_v30, %v489_v33  ;;  %v709_v33 = vld [vmem:[%s851_s4] ss:$0 sm:$0xff] }
 0x1b6   : > { %vm426_vm6 = vcmp.gt.f32.partialorder %v424_v34, 0.0  ;;  %v428_v37 = vmul.f32 0.2, %v424_v34  ;;  %v500_v38 = vmul.f32 0.2, %v496_v35  ;;  %vm498_vm7 = vcmp.gt.f32.partialorder %v496_v35, 0.0 }
 0x1b8   : > { %v430_v39 = vsel %vm426_vm6, %v424_v34, %v428_v37  ;;  %v502_v40 = vsel %vm498_vm7, %v496_v35, %v500_v38 }
 0x1b9   : > { %v432_v41 = vadd.f32 %v689_v36, %v430_v39  ;;  %v504_v42 = vadd.f32 %v689_v36, %v502_v40 }
 0x1bb   : > { %v421_v43 = vpop.permute.xlu1 %420  ;;  %v493_v44 = vpop.permute.xlu0 %492  ;;  %v435_v45 = vsel %vm434_vm8, %v432_v41, -inf  ;;  %v506_v46 = vsel %vm434_vm8, %v504_v42, -inf }
 0x1bc   : > { %v425_v47 = vadd.f32 %v423_v29, %v421_v43  ;;  %v497_v48 = vadd.f32 %v495_v30, %v493_v44  ;;  %436 = vmax.xlane.f32.xlu0 %v435_v45  ;;  %507 = vmax.xlane.f32.xlu2 %v506_v46 }
 0x1be   : > { %vm427_vm9 = vcmp.gt.f32.partialorder %v425_v47, 0.0  ;;  %v429_v50 = vmul.f32 0.2, %v425_v47  ;;  %vm499_vm10 = vcmp.gt.f32.partialorder %v497_v48, 0.0  ;;  %v501_v51 = vmul.f32 0.2, %v497_v48 }
 0x1c0   : > { %v431_v52 = vsel %vm427_vm9, %v425_v47, %v429_v50  ;;  %v503_v53 = vsel %vm499_vm10, %v497_v48, %v501_v51 }
 0x1c1   : > { %v433_v54 = vadd.f32 %v690_v49, %v431_v52  ;;  %v505_v55 = vadd.f32 %v690_v49, %v503_v53 }
 0x1c3   : > { %v438_v56 = vsel %vm434_vm8, %v433_v54, -inf  ;;  %v509_v57 = vsel %vm434_vm8, %v505_v55, -inf }
 0x1c4   : > { %439 = vmax.xlane.f32.xlu1 %v438_v56  ;;  %510 = vmax.xlane.f32.xlu2 %v509_v57 }
 0x1dc   : > { %531 = vrot.lane.b32.xlu2 %v686_v27, %s736_s22 }
 0x22f   : > { %v508_v59 = vpop.xlane.xlu2 %507  ;;  %v437_v60 = vpop.xlane.xlu0 %436 }
 0x230   : > { %v512_v61 = vsub.f32 %v504_v42, %v508_v59  ;;  %v441_v62 = vsub.f32 %v432_v41, %v437_v60 }
 0x232   : > { %v514_v63 = vmul.f32 1.442695, %v512_v61  ;;  %v443_v0 = vmul.f32 1.442695, %v441_v62 }
 0x234   : > { %710 = vpow2.f32 %v514_v63 }
 0x235   : > { %712 = vpow2.f32 %v443_v0 }
 0x237   : > { %v440_v1 = vpop.xlane.xlu1 %439  ;;  %v511_v2 = vpop.xlane.xlu2 %510 }
 0x238   : > { %v442_v3 = vsub.f32 %v433_v54, %v440_v1  ;;  %v513_v4 = vsub.f32 %v505_v55, %v511_v2 }
 0x23a   : > { %v711_v5 = vpop.eup %710  ;;  %v445_v6 = vmul.f32 1.442695, %v442_v3  ;;  %v516_v7 = vmul.f32 1.442695, %v513_v4 }
 0x23b   : > { %v713_v8 = vpop.eup %712  ;;  %v518_v9 = vsel %vm434_vm8, %v711_v5, 0.0 }
 0x23c   : > { %714 = vpow2.f32 %v445_v6  ;;  %519 = vadd.xlane.f32.xlu2 %v518_v9  ;;  %v447_v10 = vsel %vm434_vm8, %v713_v8, 0.0 }
 0x23d   : > { %716 = vpow2.f32 %v516_v7  ;;  %448 = vadd.xlane.f32.xlu0 %v447_v10 }
 0x23f   : > { %v532_v11 = vpop.permute.xlu2 %531 }
 0x240   : > { %544 = vmatpush.bf16.msra.mxu1 %v532_v11 }
 0x242   : > { %v715_v12 = vpop.eup %714 }
 0x243   : > { %v717_v13 = vpop.eup %716  ;;  %v450_v14 = vsel %vm434_vm8, %v715_v12, 0.0 }
 0x244   : > { %451 = vadd.xlane.f32.xlu1 %v450_v14  ;;  %v521_v15 = vsel %vm434_vm8, %v717_v13, 0.0 }
 0x245   : > { %522 = vadd.xlane.f32.xlu2 %v521_v15 }
 0x25d   : > { %529 = vrot.lane.b32.xlu2 %v685_v58, %s736_s22 }
 0x2af   : > { %v520_v16 = vpop.xlane.xlu2 %519 }
 0x2b0   : > { %v449_v17 = vpop.xlane.xlu0 %448 }
 0x2b1   : > { %718 = vrcp.f32 %v449_v17 }
 0x2b2   : > { %720 = vrcp.f32 %v520_v16 }
 0x2b7   : > { %v452_v18 = vpop.xlane.xlu1 %451  ;;  %v719_v20 = vpop.eup %718 }
 0x2b8   : > { %722 = vrcp.f32 %v452_v18  ;;  %v523_v19 = vpop.xlane.xlu2 %522  ;;  %v721_v21 = vpop.eup %720  ;;  %v455_v24 = vmul.f32 %v719_v20, %v713_v8 }
 0x2b9   : > { %724 = vrcp.f32 %v523_v19  ;;  %v526_v27 = vmul.f32 %v721_v21, %v711_v5 }
 0x2be   : > { %v723_v22 = vpop.eup %722 }
 0x2bf   : > { %v725_v23 = vpop.eup %724  ;;  %v456_v25 = vmul.f32 %v723_v22, %v715_v12 }
 0x2c0   : > { %v530_v26 = vpop.permute.xlu2 %529  ;;  %v527_v28 = vmul.f32 %v725_v23, %v717_v13 }
 0x2c1   : > { %545 = vmatpush.bf16.msra.mxu1 %v530_v26  ;;  %v457_v29 = vpack.c.bf16 %v456_v25, %v455_v24 }
 0x2c2   : > { %v528_v30 = vpack.c.bf16 %v527_v28, %v526_v27 }
 0x2c3   : > { %678 = vmatmul.msk.bf16.vlgmr.msra.gmra.mxu0 %vm434_vm8, %v457_v29 }
 0x2c4   : > { %679 = vmatmul.msk.bf16.vlgmr.msra.gmra.mxu1 %vm434_vm8, %v528_v30 }
 0x340   : > { %v482_v34 = vpop.f32.mrf.mxu0 }
 0x341   : > { %v547_v31 = vpop.f32.mrf.mxu1 }
 0x342   : > { %554 = vrot.lane.b32.xlu2 %v547_v31, %s737_s25 }
 0x348   : > { %v484_v41 = vpop.f32.mrf.mxu0 }
 0x349   : > { %v549_v32 = vpop.f32.mrf.mxu1 }
 0x34a   : > { %556 = vrot.lane.b32.xlu0 %v549_v32, %s737_s25 }
 0x39c   : > { %v555_v35 = vpop.permute.xlu2 %554 }
 0x39d   : > { %v561_v36 = vsel %vm560_vm11, %v482_v34, %v555_v35 }
 0x39e   : > { %v567_v37 = vadd.f32 %v709_v33, %v561_v36 }
 0x3a0   : > { %v569_v38 = vmax.f32 %v567_v37, 0.0 }
 0x3a2   : > { %v571_v39 = vmin.f32 %v569_v38, 6.0 }
 0x3a4   : > { %v573_v40 = vpack.c.bf16 %v571_v39, %v571_v39 }
 0x3a6   : > { %576 = vst.msk [vmem:[%s792_s30] sm:$0xf] %vm575_vm12, %v573_v40 }
 0x3bc   : > { %v557_v42 = vpop.permute.xlu0 %556 }
 0x3bd   : > { %v562_v43 = vsel %vm560_vm11, %v484_v41, %v557_v42 }
 0x3be   : > { %v568_v44 = vadd.f32 %v709_v33, %v562_v43 }
 0x3c0   : > { %v570_v45 = vmax.f32 %v568_v44, 0.0 }
 0x3c2   : > { %v572_v46 = vmin.f32 %v570_v45, 6.0 }
 0x3c4   : > { %v574_v47 = vpack.c.bf16 %v572_v46, %v572_v46 }
 0x3c6   : > { %577 = vst.msk [vmem:[%s792_s30 + $0x4] sm:$0xf] %vm575_vm12, %v574_v47 }
 0x3c7 PF: > { %s16_s21 = sadd.s32 1, %s732_s21  }
 0x3c8   : > { %p13_p5 = scmp.ge.s32.totalorder %s16_s21, 4  }
 0x3ca   :  { %15 = sbr.rel (!%p13_p5) target bundleno = 1 (0x1), region = 79 }

</bundles_post_ra>
